<compile_context>
chip_gen: v7x
topology: tpu7x:2x2x1
jax: 0.10.0
libtpu: 0.0.40
codegen_flags: <defaults>
</compile_context>

<pallas_src>
import functools

import jax
import jax.numpy as jnp
from jax.experimental import pallas as pl
from jax.experimental.pallas import tpu as pltpu

_LANE = 128
_MAX_BLOCK_ROWS = 2048   # 2048*128*4B = 1 MiB per f32 input block


def _cdiv(a, b):
    return -(-a // b)


def _round_up(a, b):
    return _cdiv(a, b) * b


def _pow_nonneg(q, gamma):
    """q**gamma for q >= 0 with minimal EUP transcendentals."""
    if gamma == round(gamma) and 0.0 <= gamma <= 8.0:
        k = int(round(gamma))
        if k == 0:
            return jnp.ones_like(q)
        r = q
        for _ in range(k - 1):
            r = r * q
        return r
    if (2.0 * gamma) == round(2.0 * gamma) and gamma > 0.0:
        # half-integer exponent: q**k * sqrt(q); sqrt(0)==0, so no NaNs at q==0.
        k = int(round(gamma - 0.5))
        r = jnp.sqrt(q)
        for _ in range(k):
            r = r * q
        return r
    return jnp.power(q, jnp.float32(gamma))  # generic fallback


def _focal_loss_kernel(pred_ref, target_ref, out_ref, acc_ref, *,
                       alpha, gamma, n_valid, block_rows, blocks_per_chunk):
    """Per-block focal loss, folded into an (8,128) per-chunk accumulator.

    Elementwise semantics (matches the PyTorch module):
        p_t  = pred        if target == 1 else (1 - pred)
        p_t  = clamp(p_t, 1e-5, 1.0)
        a_t  = alpha       if target == 1 else (1 - alpha)
        loss = -a_t * (1 - p_t)**gamma * log(p_t)
    Elements whose flat index >= n_valid (padding / ragged tail / duplicated
    clamped blocks) are masked to contribute exactly 0.
    """
    c = pl.program_id(0)   # chunk  ("parallel")
    b = pl.program_id(1)   # block within chunk ("arbitrary")

    @pl.when(b == 0)
    def _():
        acc_ref[...] = jnp.zeros_like(acc_ref)

    p = pred_ref[...].astype(jnp.float32)
    t = target_ref[...].astype(jnp.float32)

    is_pos = t > 0.5
    p_t = jnp.where(is_pos, p, 1.0 - p)
    p_t = jnp.clip(p_t, 1e-5, 1.0)
    a_t = jnp.where(is_pos, jnp.float32(alpha), jnp.float32(1.0 - alpha))

    q = 1.0 - p_t
    loss = (-a_t) * _pow_nonneg(q, gamma) * jnp.log(p_t)

    # Mask out padded / out-of-range elements (flat element index >= n_valid).
    bi = c * blocks_per_chunk + b
    row = jax.lax.broadcasted_iota(jnp.int32, loss.shape, 0)
    lane = jax.lax.broadcasted_iota(jnp.int32, loss.shape, 1)
    flat = (bi * block_rows + row) * _LANE + lane
    loss = jnp.where(flat < n_valid, loss, jnp.float32(0.0))

    # Fold (block_rows, 128) -> (8, 128): pure vreg (VPU) adds, no XLU per step.
    acc_ref[...] += jnp.sum(loss.reshape(block_rows // 8, 8, _LANE), axis=0)

    @pl.when(b == blocks_per_chunk - 1)
    def _():
        out_ref[...] = acc_ref[...]


def focal_loss(pred, target, alpha=0.75, gamma=1.5):
    """Pallas TPU implementation of FocalLoss.forward. Returns a scalar f32."""
    n = int(pred.size)
    p = pred.reshape(-1)         # keep original dtype; cast happens in-kernel
    t = target.reshape(-1)

    # Minimal pad to a whole 128-lane row (only when needed); padded elements
    # are masked inside the kernel so their value is irrelevant.
    n_pad = (-n) % _LANE
    if n_pad:
        p = jnp.pad(p, (0, n_pad))
        t = jnp.pad(t, (0, n_pad))
    rows = (n + n_pad) // _LANE
    p = p.reshape(rows, _LANE)
    t = t.reshape(rows, _LANE)

    # Block sizing: big blocks to amortize grid-step overhead; multiple of 16
    # sublanes so f32/bf16 inputs both tile cleanly.
    block_rows = min(_MAX_BLOCK_ROWS, _round_up(rows, 16))
    num_blocks = _cdiv(rows, block_rows)
    num_chunks = min(2, num_blocks)           # 2 -> both v7x TensorCores busy
    bpc = _cdiv(num_blocks, num_chunks)       # blocks per chunk

    if num_chunks * bpc == num_blocks:
        def in_map(c, b):
            return (c * bpc + b, 0)
    else:
        # Clamp so a (rare) trailing over-count block never DMAs out of bounds;
        # its contribution is fully masked via the flat-index test.
        def in_map(c, b):
            return (jnp.minimum(c * bpc + b, num_blocks - 1), 0)

    kernel = functools.partial(
        _focal_loss_kernel,
        alpha=float(alpha), gamma=float(gamma), n_valid=n,
        block_rows=block_rows, blocks_per_chunk=bpc)

    cost = pl.CostEstimate(
        flops=10 * n,
        transcendentals=2 * n,
        bytes_accessed=int(p.nbytes) + int(t.nbytes) + num_chunks * 8 * _LANE * 4)

    partial = pl.pallas_call(
        kernel,
        out_shape=jax.ShapeDtypeStruct((num_chunks * 8, _LANE), jnp.float32),
        grid_spec=pltpu.PrefetchScalarGridSpec(
            num_scalar_prefetch=0,
            grid=(num_chunks, bpc),
            in_specs=[
                pl.BlockSpec((block_rows, _LANE), in_map),
                pl.BlockSpec((block_rows, _LANE), in_map),
            ],
            out_specs=pl.BlockSpec((8, _LANE), lambda c, b: (c, 0)),
            scratch_shapes=[pltpu.VMEM((8, _LANE), jnp.float32)],
        ),
        compiler_params=pltpu.CompilerParams(
            dimension_semantics=("parallel", "arbitrary")),
        cost_estimate=cost,
    )(p, t)

    # Single tiny final reduction + mean divide (done once, outside the kernel).
    return jnp.sum(partial) / jnp.float32(n)


def _focal_loss_ref(pred, target, alpha=0.75, gamma=1.5):
    """Pure-JAX reference mirroring the PyTorch code, for verification."""
    p = pred.reshape(-1).astype(jnp.float32)
    t = target.reshape(-1).astype(jnp.float32)
    p_t = jnp.where(t > 0.5, p, 1.0 - p)
    p_t = jnp.clip(p_t, 1e-5, 1.0)
    a_t = jnp.where(t > 0.5, alpha, 1.0 - alpha)
    loss = -a_t * jnp.power(1.0 - p_t, gamma) * jnp.log(p_t)
    return jnp.mean(loss)


if __name__ == "__main__":
    key = jax.random.PRNGKey(0)
    k1, k2 = jax.random.split(key)

    # Small NCHW-shaped inputs: predictions are probabilities in (0, 1),
    # targets are binary labels {0, 1}.
    shape = (2, 4, 16, 16)
    pred = jax.nn.sigmoid(jax.random.normal(k1, shape, dtype=jnp.float32))
    target = jax.random.bernoulli(k2, p=0.3, shape=shape).astype(jnp.float32)

    loss = jax.block_until_ready(focal_loss(pred, target))
    ref = jax.block_until_ready(_focal_loss_ref(pred, target))

    assert jnp.allclose(loss, ref, rtol=1e-5, atol=1e-6), (loss, ref)
    print("KERNEL_OK")
</pallas_src>

<mosaic_0001>
module attributes {stable_mosaic.version = 11 : i64} {
  func.func @_focal_loss_kernel(%arg0: i32, %arg1: i32, %arg2: memref<16x128xf32, #tpu.memory_space<vmem>>, %arg3: memref<16x128xf32, #tpu.memory_space<vmem>>, %arg4: memref<8x128xf32, #tpu.memory_space<vmem>>, %arg5: memref<8x128xf32, #tpu.memory_space<vmem>>) attributes {dimension_semantics = [#tpu.dimension_semantics<parallel>, #tpu.dimension_semantics<arbitrary>], iteration_bounds = array<i64: 1, 1>, scalar_prefetch = 0 : i64, scratch_operands = 1 : i64, tpu.core_type = #tpu.core_type<tc>, window_params = [{transform_indices = @transform_0, window_bounds = array<i64: 16, 128>}, {transform_indices = @transform_1, window_bounds = array<i64: 16, 128>}, {transform_indices = @transform_2, window_bounds = array<i64: 8, 128>}]} {
    %c0_i32 = arith.constant 0 : i32
    %0 = arith.cmpi eq, %arg1, %c0_i32 : i32
    %1 = arith.extui %0 : i1 to i32
    %c0_i32_0 = arith.constant 0 : i32
    %2 = arith.cmpi ne, %1, %c0_i32_0 : i32
    scf.if %2 {
      %cst_19 = arith.constant 0.000000e+00 : f32
      %48 = vector.broadcast %cst_19 : f32 to vector<8x128xf32>
      %c0_20 = arith.constant 0 : index
      %c0_21 = arith.constant 0 : index
      %49 = vector.load %arg5[%c0_20, %c0_21] : memref<8x128xf32, #tpu.memory_space<vmem>>, vector<8x128xf32>
      tpu.vector_store %arg5[%c0_20, %c0_21], %48 {strides = array<i32>} : memref<8x128xf32, #tpu.memory_space<vmem>>, vector<8x128xf32>,
    } else {
    }
    %c0 = arith.constant 0 : index
    %c0_1 = arith.constant 0 : index
    %3 = vector.load %arg2[%c0, %c0_1] : memref<16x128xf32, #tpu.memory_space<vmem>>, vector<16x128xf32>
    %c0_2 = arith.constant 0 : index
    %c0_3 = arith.constant 0 : index
    %4 = vector.load %arg3[%c0_2, %c0_3] : memref<16x128xf32, #tpu.memory_space<vmem>>, vector<16x128xf32>
    %cst = arith.constant 5.000000e-01 : f32
    %5 = vector.broadcast %cst : f32 to vector<16x128xf32>
    %6 = arith.cmpf ogt, %4, %5 : vector<16x128xf32>
    %cst_4 = arith.constant 1.000000e+00 : f32
    %7 = vector.broadcast %cst_4 : f32 to vector<16x128xf32>
    %8 = arith.subf %7, %3 : vector<16x128xf32>
    %9 = arith.select %6, %3, %8 : vector<16x128xi1>, vector<16x128xf32>
    %cst_5 = arith.constant 9.99999974E-6 : f32
    %cst_6 = arith.constant 1.000000e+00 : f32
    %10 = vector.broadcast %cst_5 : f32 to vector<16x128xf32>
    %11 = arith.maximumf %10, %9 : vector<16x128xf32>
    %12 = vector.broadcast %cst_6 : f32 to vector<16x128xf32>
    %13 = arith.minimumf %12, %11 : vector<16x128xf32>
    %cst_7 = arith.constant 7.500000e-01 : f32
    %cst_8 = arith.constant 2.500000e-01 : f32
    %14 = vector.broadcast %cst_7 : f32 to vector<16x128xf32>
    %15 = vector.broadcast %cst_8 : f32 to vector<16x128xf32>
    %16 = arith.select %6, %14, %15 : vector<16x128xi1>, vector<16x128xf32>
    %cst_9 = arith.constant 1.000000e+00 : f32
    %17 = vector.broadcast %cst_9 : f32 to vector<16x128xf32>
    %18 = arith.subf %17, %13 : vector<16x128xf32>
    %cst_10 = arith.constant 0.000000e+00 : f32
    %19 = vector.broadcast %cst_10 : f32 to vector<16x128xf32>
    %20 = arith.subf %19, %16 : vector<16x128xf32>
    %21 = math.sqrt %18 : vector<16x128xf32>
    %22 = arith.mulf %21, %18 : vector<16x128xf32>
    %23 = arith.mulf %20, %22 : vector<16x128xf32>
    %24 = math.log %13 : vector<16x128xf32>
    %25 = arith.mulf %23, %24 : vector<16x128xf32>
    %c1_i32 = arith.constant 1 : i32
    %26 = arith.muli %arg0, %c1_i32 : i32
    %27 = arith.addi %26, %arg1 : i32
    %28 = tpu.iota {dimensions = array<i32: 0>} : vector<16x128xi32>
    %29 = tpu.iota {dimensions = array<i32: 1>} : vector<16x128xi32>
    %c16_i32 = arith.constant 16 : i32
    %30 = arith.muli %27, %c16_i32 : i32
    %31 = vector.broadcast %30 : i32 to vector<16x128xi32>
    %32 = arith.addi %31, %28 : vector<16x128xi32>
    %c128_i32 = arith.constant 128 : i32
    %33 = vector.broadcast %c128_i32 : i32 to vector<16x128xi32>
    %34 = arith.muli %32, %33 : vector<16x128xi32>
    %35 = arith.addi %34, %29 : vector<16x128xi32>
    %c2048_i32 = arith.constant 2048 : i32
    %36 = vector.broadcast %c2048_i32 : i32 to vector<16x128xi32>
    %37 = arith.cmpi slt, %35, %36 : vector<16x128xi32>
    %cst_11 = arith.constant 0.000000e+00 : f32
    %38 = vector.broadcast %cst_11 : f32 to vector<16x128xf32>
    %39 = arith.select %37, %25, %38 : vector<16x128xi1>, vector<16x128xf32>
    %c0_12 = arith.constant 0 : index
    %c0_13 = arith.constant 0 : index
    %40 = vector.load %arg5[%c0_12, %c0_13] : memref<8x128xf32, #tpu.memory_space<vmem>>, vector<8x128xf32>
    %41 = vector.shape_cast %39 : vector<16x128xf32> to vector<2x8x128xf32>
    %cst_14 = arith.constant dense<0.000000e+00> : vector<8x128xf32>
    %42 = vector.multi_reduction <add>, %41, %cst_14 [0] : vector<2x8x128xf32> to vector<8x128xf32>
    %43 = arith.addf %40, %42 : vector<8x128xf32>
    %c0_15 = arith.constant 0 : index
    %c0_16 = arith.constant 0 : index
    %44 = vector.load %arg5[%c0_15, %c0_16] : memref<8x128xf32, #tpu.memory_space<vmem>>, vector<8x128xf32>
    tpu.vector_store %arg5[%c0_15, %c0_16], %43 {strides = array<i32>} : memref<8x128xf32, #tpu.memory_space<vmem>>, vector<8x128xf32>,
    %c0_i32_17 = arith.constant 0 : i32
    %45 = arith.cmpi eq, %arg1, %c0_i32_17 : i32
    %46 = arith.extui %45 : i1 to i32
    %c0_i32_18 = arith.constant 0 : i32
    %47 = arith.cmpi ne, %46, %c0_i32_18 : i32
    scf.if %47 {
      %c0_19 = arith.constant 0 : index
      %c0_20 = arith.constant 0 : index
      %48 = vector.load %arg5[%c0_19, %c0_20] : memref<8x128xf32, #tpu.memory_space<vmem>>, vector<8x128xf32>
      %c0_21 = arith.constant 0 : index
      %c0_22 = arith.constant 0 : index
      %49 = vector.load %arg4[%c0_21, %c0_22] : memref<8x128xf32, #tpu.memory_space<vmem>>, vector<8x128xf32>
      tpu.vector_store %arg4[%c0_21, %c0_22], %48 {strides = array<i32>} : memref<8x128xf32, #tpu.memory_space<vmem>>, vector<8x128xf32>,
    } else {
    }
    return
  }
  func.func @transform_0(%arg0: i32, %arg1: i32) -> (i32, i32) {
    %c1_i32 = arith.constant 1 : i32
    %0 = arith.muli %arg0, %c1_i32 : i32
    %1 = arith.addi %0, %arg1 : i32
    %c0_i32 = arith.constant 0 : i32
    %c0_i32_0 = arith.constant 0 : i32
    return %1, %c0_i32 : i32, i32
  }
  func.func @transform_1(%arg0: i32, %arg1: i32) -> (i32, i32) {
    %c1_i32 = arith.constant 1 : i32
    %0 = arith.muli %arg0, %c1_i32 : i32
    %1 = arith.addi %0, %arg1 : i32
    %c0_i32 = arith.constant 0 : i32
    %c0_i32_0 = arith.constant 0 : i32
    return %1, %c0_i32 : i32, i32
  }
  func.func @transform_2(%arg0: i32, %arg1: i32) -> (i32, i32) {
    %c0_i32 = arith.constant 0 : i32
    %c0_i32_0 = arith.constant 0 : i32
    return %arg0, %c0_i32 : i32, i32
  }
}

</mosaic_0001>

<bundles_post_ra>
// kernel: tpu_custom_call.1
= control target key start
LH: loop header
LB: loop body
LE: loop exit
PB: predicated region body
PF: predicated region fallthrough
CT: control target
= control target key end

     0   :  { %7 = vsyncpa [#allocation4], 0  ;;  %s291_s0 = inlined_call_operand.hbm [shape: f32[16,128], index: 0, kind: input, shape index: {}]   ;;  %s292_s1 = inlined_call_operand.hbm [shape: f32[16,128], index: 1, kind: input, shape index: {}]   ;;  %s293_s2 = inlined_call_operand.hbm [shape: f32[8,128], index: 2, kind: output, shape index: {}]  }
   0x1   :  { %8 = vsyncpa [#allocation7], 0 }
   0x2   :  { %9 = vsyncpa [#allocation5], 0  ;;  %s230_s9 = smov [#allocation3]   ;;  %s158_s13 = scalar_lea.hbm %s291_s0, 256 }
   0x3   :  { %s19_s10 = sshll.u32 %s230_s9, 4  ;;  %p159_p0 = scmp.ne.s32.totalorder %s291_s0, %s158_s13  ;;  %s20_s10 = int_to_ptr.vmem [resolvable:$true] %s19_s10 }
   0x4   :  { %p162_p1 = scmp.lt.u32.totalorder %s158_s13, %s291_s0 }
   0x6   :  { %p164_p2 = pnand %p162_p1, %p159_p0 }
   0x8   :  { %167 = shalt.err (!%p164_p2)
}
   0x9   :  { %s168_s18 = scalar_lea.vmem %s20_s10, 256  ;;  %p173_p4 = scmp.lt.s32.totalorder %s20_s10, %s20_s10 }
   0xa   :  { %p169_p3 = scmp.ne.s32.totalorder %s20_s10, %s168_s18  ;;  %p174_p5 = scmp.lt.s32.totalorder %s168_s18, %s168_s18 }
   0xc   :  { %p175_p6 = por %p174_p5, %p173_p4 }
   0xe   :  { %p176_p7 = pnand %p175_p6, %p169_p3 }
  0x10   :  { %179 = shalt.err (!%p176_p7)
}
  0x11   :  { %s231_s19 = smov 128   ;;  %s232_s20 = smov 8  }
  0x12   :  { %25 = dma.hbm_to_vmem [thread:$0]  %s291_s0, 256, %s20_s10, [#allocation4], %s231_s19, %s231_s19, %s232_s20  }
  0x13   :  { %s233_s23 = smov [#allocation6]   ;;  %s180_s27 = scalar_lea.hbm %s292_s1, 256 }
  0x14   :  { %s35_s24 = sshll.u32 %s233_s23, 4  ;;  %p181_p8 = scmp.ne.s32.totalorder %s292_s1, %s180_s27  ;;  %s36_s24 = int_to_ptr.vmem [resolvable:$true] %s35_s24 }
  0x15   :  { %p184_p9 = scmp.lt.u32.totalorder %s180_s27, %s292_s1 }
  0x17   :  { %p186_p10 = pnand %p184_p9, %p181_p8 }
  0x19   :  { %189 = shalt.err (!%p186_p10)
}
  0x1a   :  { %s190_s4 = scalar_lea.vmem %s36_s24, 256  ;;  %p195_p12 = scmp.lt.s32.totalorder %s36_s24, %s36_s24 }
  0x1b   :  { %p191_p11 = scmp.ne.s32.totalorder %s36_s24, %s190_s4  ;;  %p196_p13 = scmp.lt.s32.totalorder %s190_s4, %s190_s4 }
  0x1d   :  { %p197_p0 = por %p196_p13, %p195_p12 }
  0x1f   :  { %p198_p1 = pnand %p197_p0, %p191_p11 }
  0x21   :  { %201 = shalt.err (!%p198_p1)
}
  0x22   :  { %41 = dma.hbm_to_vmem [thread:$0]  %s292_s1, 256, %s36_s24, [#allocation7], %s231_s19, %s231_s19, %s232_s20  }
  0x23   :  { %224 = dma.done.wait [#allocation4], 256  }
  0x24   :  { %225 = vsyncadd [#allocation4], 4294967040 }
  0x25   :  { %226 = dma.done.wait [#allocation7], 256  }
  0x26   :  { %227 = vsyncadd [#allocation7], 4294967040  ;;  %v57_v0 = vld [vmem:[#allocation3] sm:$0xff]  ;;  %v58_v1 = vld [vmem:[#allocation3 + $0x8] sm:$0xff]  ;;  %v102_v12 = vlaneseq  ;;  %v234_v21 = vmov 0.25   ;;  %s235_s1 = smov [#allocation8]  }
  0x27   :  { %v59_v2 = vld [vmem:[#allocation6] sm:$0xff]  ;;  %v60_v3 = vld [vmem:[#allocation6 + $0x8] sm:$0xff]  ;;  %v63_v4 = vsub.f32 1.0, %v57_v0  ;;  %v64_v5 = vsub.f32 1.0, %v58_v1  ;;  %s134_s6 = sshll.u32 %s235_s1, 4  ;;  %s135_s6 = int_to_ptr.vmem [resolvable:$true] %s134_s6 }
  0x28   :  { %vm61_vm0 = vcmp.gt.f32.partialorder %v59_v2, 0.5  ;;  %vm62_vm1 = vcmp.gt.f32.partialorder %v60_v3, 0.5  ;;  %v103_v15 = vshrl.u32 %v102_v12, 7  ;;  %v106_v17 = vand.u32 127, %v102_v12  ;;  %s202_s7 = scalar_lea.vmem %s135_s6, 128  ;;  %p207_p3 = scmp.lt.s32.totalorder %s135_s6, %s135_s6 }
  0x29   :  { %v65_v6 = vsel %vm61_vm0, %v57_v0, %v63_v4  ;;  %v66_v7 = vsel %vm62_vm1, %v58_v1, %v64_v5  ;;  %v71_v22 = vsel %vm61_vm0, 0.75, %v234_v21  ;;  %v72_v23 = vsel %vm62_vm1, 0.75, %v234_v21  ;;  %p203_p2 = scmp.ne.s32.totalorder %s135_s6, %s202_s7  ;;  %p208_p4 = scmp.lt.s32.totalorder %s202_s7, %s202_s7 }
  0x2a   :  { %v67_v8 = vmax.f32 %v65_v6, 1e-05  ;;  %v68_v9 = vmax.f32 %v66_v7, 1e-05  ;;  %v104_v16 = vadd.s32 8, %v103_v15  ;;  %v111_v18 = vmul.u32 128, %v103_v15 }
  0x2b   :  { %v75_v31 = vsub.f32 0.0, %v71_v22  ;;  %v76_v33 = vsub.f32 0.0, %v72_v23  ;;  %p209_p5 = por %p208_p4, %p207_p3 }
  0x2c   :  { %v69_v10 = vmin.f32 %v67_v8, 1.0  ;;  %v70_v11 = vmin.f32 %v68_v9, 1.0  ;;  %v112_v19 = vmul.u32 128, %v104_v16  ;;  %v113_v36 = vadd.s32 %v111_v18, %v106_v17 }
  0x2d   :  { %p210_p6 = pnand %p209_p5, %p203_p2 }
  0x2e   :  { %v73_v13 = vsub.f32 1.0, %v69_v10  ;;  %v74_v14 = vsub.f32 1.0, %v70_v11  ;;  %v114_v40 = vadd.s32 %v112_v19, %v106_v17  ;;  %vm115_vm6 = vcmp.lt.s32.totalorder %v113_v36, 2048 }
  0x30   :  { %150 = vrsqrt.f32 %v73_v13  ;;  %vm79_vm2 = vcmp.eq.f32.partialorder %v73_v13, inf  ;;  %v82_v24 = vand.u32 2147483648, %v73_v13  ;;  %vm81_vm3 = vcmp.eq.f32.partialorder %v73_v13, 0.0 }
  0x31   :  { %152 = vrsqrt.f32 %v74_v14  ;;  %vm86_vm4 = vcmp.eq.f32.partialorder %v74_v14, inf  ;;  %v89_v27 = vand.u32 2147483648, %v74_v14  ;;  %vm88_vm5 = vcmp.eq.f32.partialorder %v74_v14, 0.0 }
  0x32   :  { %154 = vlog2.f32 %v69_v10  ;;  %vm116_vm7 = vcmp.lt.s32.totalorder %v114_v40, 2048 }
  0x33   :  { %156 = vlog2.f32 %v70_v11 }
  0x3a   :  { %v151_v20 = vpop.eup %150 }
  0x3b   :  { %v153_v25 = vpop.eup %152  ;;  %v78_v26 = vmul.f32 %v151_v20, %v73_v13 }
  0x3c   :  { %v155_v28 = vpop.eup %154  ;;  %v85_v29 = vmul.f32 %v153_v25, %v74_v14 }
  0x3d   :  { %v157_v30 = vpop.eup %156  ;;  %v80_v32 = vsel %vm79_vm2, %v73_v13, %v78_v26  ;;  %v96_v39 = vmul.f32 0.6931472, %v155_v28 }
  0x3e   :  { %v83_v34 = vsel %vm81_vm3, %v82_v24, %v80_v32  ;;  %v87_v35 = vsel %vm86_vm4, %v74_v14, %v85_v29  ;;  %v98_v42 = vmul.f32 0.6931472, %v157_v30 }
  0x3f   :  { %v90_v37 = vsel %vm88_vm5, %v89_v27, %v87_v35  ;;  %v91_v38 = vmul.f32 %v83_v34, %v73_v13 }
  0x40   :  { %v92_v41 = vmul.f32 %v90_v37, %v74_v14 }
  0x41   :  { %v93_v43 = vmul.f32 %v91_v38, %v75_v31 }
  0x42   :  { %v94_v44 = vmul.f32 %v92_v41, %v76_v33 }
  0x43   :  { %v99_v45 = vmul.f32 %v96_v39, %v93_v43 }
  0x44   :  { %v100_v46 = vmul.f32 %v98_v42, %v94_v44 }
  0x45   :  { %v117_v47 = vsel %vm115_vm6, %v99_v45, 0.0 }
  0x46   :  { %v118_v48 = vsel %vm116_vm7, %v100_v46, 0.0 }
  0x47   :  { %v120_v49 = vadd.f32 %v118_v48, %v117_v47 }
  0x49   :  { %127 = vst [vmem:[#allocation8] sm:$0xff] %v120_v49 }
  0x4a   :  { %213 = shalt.err (!%p210_p6)
}
  0x4b   :  { %s214_s10 = scalar_lea.hbm %s293_s2, 128 }
  0x4c   :  { %p215_p7 = scmp.ne.s32.totalorder %s293_s2, %s214_s10  ;;  %p218_p8 = scmp.lt.u32.totalorder %s214_s10, %s293_s2 }
  0x4e   :  { %p220_p9 = pnand %p218_p8, %p215_p7 }
  0x50   :  { %223 = shalt.err (!%p220_p9)
}
  0x51   :  { %137 = dma.vmem_to_hbm [thread:$0]  %s135_s6, 128, %s293_s2, [#allocation5]  }
  0x52   :  { %228 = dma.done.wait [#allocation5], 128  }
  0x53   :  { %229 = vsyncadd [#allocation5], 4294967168 }
  0x54   :  { %141 = vsyncpa [#allocation4], 1 }
  0x55   :  { %142 = vsyncpa [#allocation7], 1 }
  0x56   :  { %143 = vsyncpa [#allocation5], 1 }

</bundles_post_ra>
